<compile_context>
chip_gen: v7x
topology: tpu7x:2x2x1
jax: 0.10.0
libtpu: 0.0.40
codegen_flags: <defaults>
</compile_context>

<pallas_src>
import math
import functools

import jax
import jax.numpy as jnp
from jax import lax
from jax.experimental import pallas as pl
from jax.experimental.pallas import tpu as pltpu

LN_EPS = 1e-5


# ----------------------------- kernel ------------------------------------- #

def _layernorm(x, gamma, beta):
    mu = jnp.mean(x, axis=-1, keepdims=True)
    var = jnp.mean((x - mu) ** 2, axis=-1, keepdims=True)
    return (x - mu) * lax.rsqrt(var + LN_EPS) * gamma + beta


def _gelu_exact(x):
    # nn.GELU() default = exact erf-based GELU
    return 0.5 * x * (1.0 + lax.erf(x * (1.0 / math.sqrt(2.0))))


def block_kernel(xm_ref, ln_ref,
                 wqkv_ref, bqkv_ref,          # fused QKV projection (C, 3C), (1, 3C)
                 wo_ref, bo_ref,              # attn output proj (C, C), (1, C)
                 wfc_ref, bfc_ref,            # MLP fc (C, 4C), (1, 4C)
                 wmp_ref, bmp_ref,            # MLP proj (4C, C), (1, C)
                 o_ref, *, n_head, head_dim, seq_len, batch_block, mm_dtype):
    C = n_head * head_dim

    def mm(a, b):
        # Heavy matmuls optionally fed to the MXU in bf16; accumulate in f32.
        return jnp.dot(a.astype(mm_dtype), b.astype(mm_dtype),
                       preferred_element_type=jnp.float32)

    # Stacked rows slab: row 0 = x, rows 1..4 = scale1/shift1/scale2/shift2,
    # each (R, C) with R = batch_block * seq_len.
    x = xm_ref[0]
    scale1 = xm_ref[1]
    shift1 = xm_ref[2]
    scale2 = xm_ref[3]
    shift2 = xm_ref[4]

    ln = ln_ref[...]                     # (4, C)
    g1, b1 = ln[0:1, :], ln[1:2, :]
    g2, b2 = ln[2:3, :], ln[3:4, :]

    # --- attention branch: x + proj(attn(ln_1(x) * (1 + scale1) + shift1)) ---
    h = _layernorm(x, g1, b1) * (1.0 + scale1) + shift1
    qkv = mm(h, wqkv_ref[...]) + bqkv_ref[...]          # (R, 3C) fused QKV

    sm_scale = 1.0 / math.sqrt(head_dim)
    y_rows = []
    for b in range(batch_block):                        # static, small
        r0 = b * seq_len
        heads = []
        for hd in range(n_head):                        # static, small
            c0 = hd * head_dim
            q = qkv[r0:r0 + seq_len, c0:c0 + head_dim]
            k = qkv[r0:r0 + seq_len, C + c0:C + c0 + head_dim]
            v = qkv[r0:r0 + seq_len, 2 * C + c0:2 * C + c0 + head_dim]
            # q @ k^T without materializing the transpose.
            att = lax.dot_general(
                q.astype(mm_dtype), k.astype(mm_dtype),
                (((1,), (1,)), ((), ())),
                preferred_element_type=jnp.float32) * sm_scale
            att = jnp.exp(att - jnp.max(att, axis=-1, keepdims=True))
            att = att * pl.reciprocal(jnp.sum(att, axis=-1, keepdims=True),
                                      approx=True)
            heads.append(mm(att, v))                    # (T, D)
        y_rows.append(jnp.concatenate(heads, axis=-1))  # (T, C)
    y = y_rows[0] if batch_block == 1 else jnp.concatenate(y_rows, axis=0)
    x = x + mm(y, wo_ref[...]) + bo_ref[...]            # single output proj

    # --- MLP branch: x + mlp(ln_2(x) * (1 + scale2) + shift2) ---
    h2 = _layernorm(x, g2, b2) * (1.0 + scale2) + shift2
    h2 = mm(h2, wfc_ref[...]) + bfc_ref[...]
    h2 = _gelu_exact(h2)
    x = x + mm(h2, wmp_ref[...]) + bmp_ref[...]

    o_ref[...] = x.astype(o_ref.dtype)


# ----------------------------- wrapper ------------------------------------- #

def _rep_spec(a):
    zeros = (0,) * a.ndim
    return pl.BlockSpec(a.shape, lambda i, _z=zeros: _z)


def block_forward(x, time_emb, cl_emb, params, n_head,
                  matmul_dtype=jnp.float32):
    B, T, C = x.shape
    D = C // n_head
    p = params

    # Conditioning (SiLU -> Linear) computed once in XLA; these are whole ops
    # moved out of the kernel, not a pre-scale of kernel inputs.
    silu = lambda z: z * jax.nn.sigmoid(z)
    ss = silu(time_emb) @ p["W_time"] + p["b_time"]     # (B, 2C)
    sh = silu(cl_emb) @ p["W_class"] + p["b_class"]     # (B, 2C)
    scale1, scale2 = ss[:, :C], ss[:, C:]
    shift1, shift2 = sh[:, :C], sh[:, C:]

    def rows(a):  # (B, C) -> (B*T, C), row b*T+t gets a[b]
        return jnp.broadcast_to(a[:, None, :], (B, T, C)).reshape(B * T, C)

    x_flat = x.reshape(B * T, C)
    # One stacked rows slab: x + four modulation tensors -> (5, B*T, C).
    xm = jnp.stack([x_flat, rows(scale1), rows(shift1),
                    rows(scale2), rows(shift2)], axis=0)
    ln_params = jnp.stack([p["ln1_g"], p["ln1_b"], p["ln2_g"], p["ln2_b"]],
                          axis=0)                       # (4, C)

    W_qkv, b_qkv = p["W_attn"], p["b_attn"].reshape(1, 3 * C)
    W_o, b_o = p["W_proj"], p["b_proj"].reshape(1, C)
    W_fc, b_fc = p["W_fc"], p["b_fc"].reshape(1, 4 * C)
    W_mp, b_mp = p["W_mproj"], p["b_mproj"].reshape(1, C)

    # Coarse batch-block grid: at most two parallel steps (keeps both v7x
    # TensorCores busy) with several batch rows per step for larger B.
    steps = 2 if (B >= 2 and B % 2 == 0) else 1
    bb = B // steps
    R = bb * T

    weights = [ln_params, W_qkv, b_qkv, W_o, b_o, W_fc, b_fc, W_mp, b_mp]

    in_specs = [
        pl.BlockSpec((5, R, C), lambda i: (0, i, 0)),    # x + modulation rows
    ] + [_rep_spec(w) for w in weights]                  # replicated weights

    kernel = functools.partial(block_kernel, n_head=n_head, head_dim=D,
                               seq_len=T, batch_block=bb,
                               mm_dtype=matmul_dtype)

    out_flat = pl.pallas_call(
        kernel,
        out_shape=jax.ShapeDtypeStruct((B * T, C), jnp.float32),
        grid=(steps,),
        in_specs=in_specs,
        out_specs=pl.BlockSpec((R, C), lambda i: (i, 0)),
        compiler_params=pltpu.CompilerParams(
            dimension_semantics=("parallel",),
            vmem_limit_bytes=32 * 1024 * 1024),
    )(xm, *weights)

    return out_flat.reshape(B, T, C)


# ----------------------------- pure-JAX reference -------------------------- #

def block_reference(x, t, c, p, n_head):
    B, T, C = x.shape
    D = C // n_head

    def ln(z, g, b):
        mu = z.mean(-1, keepdims=True)
        var = ((z - mu) ** 2).mean(-1, keepdims=True)
        return (z - mu) / jnp.sqrt(var + LN_EPS) * g + b

    silu = lambda z: z * jax.nn.sigmoid(z)

    ss = silu(t) @ p["W_time"] + p["b_time"]          # (B, 2C)
    scale1, scale2 = ss[:, None, :C], ss[:, None, C:]
    sh = silu(c) @ p["W_class"] + p["b_class"]
    shift1, shift2 = sh[:, None, :C], sh[:, None, C:]

    h = ln(x, p["ln1_g"], p["ln1_b"]) * (1.0 + scale1) + shift1
    qkv = h @ p["W_attn"] + p["b_attn"]
    q, k, v = jnp.split(qkv, 3, axis=-1)
    q = q.reshape(B, T, n_head, D).transpose(0, 2, 1, 3)
    k = k.reshape(B, T, n_head, D).transpose(0, 2, 1, 3)
    v = v.reshape(B, T, n_head, D).transpose(0, 2, 1, 3)
    att = jnp.einsum("bhqd,bhkd->bhqk", q, k) / math.sqrt(D)
    att = jax.nn.softmax(att, axis=-1)
    y = jnp.einsum("bhqk,bhkd->bhqd", att, v).transpose(0, 2, 1, 3).reshape(B, T, C)
    x = x + y @ p["W_proj"] + p["b_proj"]

    h2 = ln(x, p["ln2_g"], p["ln2_b"]) * (1.0 + scale2) + shift2
    h2 = h2 @ p["W_fc"] + p["b_fc"]
    h2 = 0.5 * h2 * (1.0 + lax.erf(h2 / math.sqrt(2.0)))
    x = x + h2 @ p["W_mproj"] + p["b_mproj"]
    return x


# ----------------------------- main ---------------------------------------- #

if __name__ == "__main__":
    B, T, C = 2, 8, 32           # batch, seq, n_embed
    n_head = 4
    S = 16                       # sinusoidal_dim

    key = jax.random.PRNGKey(0)
    ks = jax.random.split(key, 18)

    x = jax.random.normal(ks[0], (B, T, C), dtype=jnp.float32)
    time_emb = jax.random.normal(ks[1], (B, S), dtype=jnp.float32)
    cl_emb = jax.random.normal(ks[2], (B, S), dtype=jnp.float32)

    params = {
        "W_time":  jax.random.normal(ks[3], (S, 2 * C)) * 0.1,
        "b_time":  jax.random.normal(ks[4], (2 * C,)) * 0.05,
        "W_class": jax.random.normal(ks[5], (S, 2 * C)) * 0.1,
        "b_class": jax.random.normal(ks[6], (2 * C,)) * 0.05,
        "ln1_g":   jnp.ones((C,), jnp.float32),
        "ln1_b":   jnp.zeros((C,), jnp.float32),
        "ln2_g":   jnp.ones((C,), jnp.float32),
        "ln2_b":   jnp.zeros((C,), jnp.float32),
        "W_attn":  jax.random.normal(ks[7], (C, 3 * C)) * 0.1,
        "b_attn":  jax.random.normal(ks[8], (3 * C,)) * 0.05,
        "W_proj":  jax.random.normal(ks[9], (C, C)) * 0.1,
        "b_proj":  jax.random.normal(ks[10], (C,)) * 0.05,
        "W_fc":    jax.random.normal(ks[11], (C, 4 * C)) * 0.1,
        "b_fc":    jax.random.normal(ks[12], (4 * C,)) * 0.05,
        "W_mproj": jax.random.normal(ks[13], (4 * C, C)) * 0.1,
        "b_mproj": jax.random.normal(ks[14], (C,)) * 0.05,
    }
    params = {k: v.astype(jnp.float32) for k, v in params.items()}

    out = block_forward(x, time_emb, cl_emb, params, n_head)
    out = jax.block_until_ready(out)

    ref = block_reference(x, time_emb, cl_emb, params, n_head)
    assert out.shape == (B, T, C)
    # Only numerical deviation from the f32 reference is the EUP approximate
    # reciprocal in the softmax normalization -> slightly relaxed tolerance.
    assert jnp.allclose(out, ref, atol=5e-3, rtol=5e-3), (
        float(jnp.max(jnp.abs(out - ref))))

    print("KERNEL_OK")
</pallas_src>

<mosaic_0001>
module attributes {stable_mosaic.version = 11 : i64} {
  func.func @block_kernel(%arg0: i32, %arg1: memref<5x8x32xf32, #tpu.memory_space<vmem>>, %arg2: memref<4x32xf32, #tpu.memory_space<vmem>>, %arg3: memref<32x96xf32, #tpu.memory_space<vmem>>, %arg4: memref<1x96xf32, #tpu.memory_space<vmem>>, %arg5: memref<32x32xf32, #tpu.memory_space<vmem>>, %arg6: memref<1x32xf32, #tpu.memory_space<vmem>>, %arg7: memref<32x128xf32, #tpu.memory_space<vmem>>, %arg8: memref<1x128xf32, #tpu.memory_space<vmem>>, %arg9: memref<128x32xf32, #tpu.memory_space<vmem>>, %arg10: memref<1x32xf32, #tpu.memory_space<vmem>>, %arg11: memref<8x32xf32, #tpu.memory_space<vmem>>) attributes {dimension_semantics = [#tpu.dimension_semantics<parallel>], iteration_bounds = array<i64: 2>, scalar_prefetch = 0 : i64, scratch_operands = 0 : i64, tpu.core_type = #tpu.core_type<tc>, window_params = [{transform_indices = @transform_0, window_bounds = array<i64: 5, 8, 32>}, {pipeline_mode = #tpu.pipeline_mode<synchronous>, transform_indices = @transform_1, window_bounds = array<i64: 4, 32>}, {pipeline_mode = #tpu.pipeline_mode<synchronous>, transform_indices = @transform_2, window_bounds = array<i64: 32, 96>}, {pipeline_mode = #tpu.pipeline_mode<synchronous>, transform_indices = @transform_3, window_bounds = array<i64: 1, 96>}, {pipeline_mode = #tpu.pipeline_mode<synchronous>, transform_indices = @transform_4, window_bounds = array<i64: 32, 32>}, {pipeline_mode = #tpu.pipeline_mode<synchronous>, transform_indices = @transform_5, window_bounds = array<i64: 1, 32>}, {pipeline_mode = #tpu.pipeline_mode<synchronous>, transform_indices = @transform_6, window_bounds = array<i64: 32, 128>}, {pipeline_mode = #tpu.pipeline_mode<synchronous>, transform_indices = @transform_7, window_bounds = array<i64: 1, 128>}, {pipeline_mode = #tpu.pipeline_mode<synchronous>, transform_indices = @transform_8, window_bounds = array<i64: 128, 32>}, {pipeline_mode = #tpu.pipeline_mode<synchronous>, transform_indices = @transform_9, window_bounds = array<i64: 1, 32>}, {transform_indices = @transform_10, window_bounds = array<i64: 8, 32>}]} {
    %c0 = arith.constant 0 : index
    %c0_0 = arith.constant 0 : index
    %c0_1 = arith.constant 0 : index
    %0 = vector.load %arg1[%c0, %c0_0, %c0_1] : memref<5x8x32xf32, #tpu.memory_space<vmem>>, vector<1x8x32xf32>
    %1 = vector.shape_cast %0 : vector<1x8x32xf32> to vector<8x32xf32>
    %c1 = arith.constant 1 : index
    %c0_2 = arith.constant 0 : index
    %c0_3 = arith.constant 0 : index
    %2 = vector.load %arg1[%c1, %c0_2, %c0_3] : memref<5x8x32xf32, #tpu.memory_space<vmem>>, vector<1x8x32xf32>
    %3 = vector.shape_cast %2 : vector<1x8x32xf32> to vector<8x32xf32>
    %c2 = arith.constant 2 : index
    %c0_4 = arith.constant 0 : index
    %c0_5 = arith.constant 0 : index
    %4 = vector.load %arg1[%c2, %c0_4, %c0_5] : memref<5x8x32xf32, #tpu.memory_space<vmem>>, vector<1x8x32xf32>
    %5 = vector.shape_cast %4 : vector<1x8x32xf32> to vector<8x32xf32>
    %c3 = arith.constant 3 : index
    %c0_6 = arith.constant 0 : index
    %c0_7 = arith.constant 0 : index
    %6 = vector.load %arg1[%c3, %c0_6, %c0_7] : memref<5x8x32xf32, #tpu.memory_space<vmem>>, vector<1x8x32xf32>
    %7 = vector.shape_cast %6 : vector<1x8x32xf32> to vector<8x32xf32>
    %c4 = arith.constant 4 : index
    %c0_8 = arith.constant 0 : index
    %c0_9 = arith.constant 0 : index
    %8 = vector.load %arg1[%c4, %c0_8, %c0_9] : memref<5x8x32xf32, #tpu.memory_space<vmem>>, vector<1x8x32xf32>
    %9 = vector.shape_cast %8 : vector<1x8x32xf32> to vector<8x32xf32>
    %c0_10 = arith.constant 0 : index
    %c0_11 = arith.constant 0 : index
    %10 = vector.load %arg2[%c0_10, %c0_11] : memref<4x32xf32, #tpu.memory_space<vmem>>, vector<4x32xf32>
    %11 = vector.extract_strided_slice %10 {offsets = [0, 0], sizes = [1, 32], strides = [1, 1]} : vector<4x32xf32> to vector<1x32xf32>
    %12 = vector.extract_strided_slice %10 {offsets = [1, 0], sizes = [1, 32], strides = [1, 1]} : vector<4x32xf32> to vector<1x32xf32>
    %13 = vector.extract_strided_slice %10 {offsets = [2, 0], sizes = [1, 32], strides = [1, 1]} : vector<4x32xf32> to vector<1x32xf32>
    %14 = vector.extract_strided_slice %10 {offsets = [3, 0], sizes = [1, 32], strides = [1, 1]} : vector<4x32xf32> to vector<1x32xf32>
    %cst = arith.constant dense<0.000000e+00> : vector<8xf32>
    %15 = vector.multi_reduction <add>, %1, %cst [1] : vector<8x32xf32> to vector<8xf32>
    %16 = vector.shape_cast %15 : vector<8xf32> to vector<8x1xf32>
    %cst_12 = arith.constant 3.200000e+01 : f32
    %17 = vector.broadcast %cst_12 : f32 to vector<8x1xf32>
    %18 = arith.divf %16, %17 : vector<8x1xf32>
    %19 = vector.broadcast %18 : vector<8x1xf32> to vector<8x32xf32>
    %20 = arith.subf %1, %19 : vector<8x32xf32>
    %21 = arith.mulf %20, %20 : vector<8x32xf32>
    %cst_13 = arith.constant dense<0.000000e+00> : vector<8xf32>
    %22 = vector.multi_reduction <add>, %21, %cst_13 [1] : vector<8x32xf32> to vector<8xf32>
    %23 = vector.shape_cast %22 : vector<8xf32> to vector<8x1xf32>
    %cst_14 = arith.constant 3.200000e+01 : f32
    %24 = vector.broadcast %cst_14 : f32 to vector<8x1xf32>
    %25 = arith.divf %23, %24 : vector<8x1xf32>
    %26 = vector.broadcast %18 : vector<8x1xf32> to vector<8x32xf32>
    %27 = arith.subf %1, %26 : vector<8x32xf32>
    %cst_15 = arith.constant 9.99999974E-6 : f32
    %28 = vector.broadcast %cst_15 : f32 to vector<8x1xf32>
    %29 = arith.addf %25, %28 : vector<8x1xf32>
    %30 = math.rsqrt %29 : vector<8x1xf32>
    %31 = vector.broadcast %30 : vector<8x1xf32> to vector<8x32xf32>
    %32 = arith.mulf %27, %31 : vector<8x32xf32>
    %33 = vector.broadcast %11 : vector<1x32xf32> to vector<8x32xf32>
    %34 = arith.mulf %32, %33 : vector<8x32xf32>
    %35 = vector.broadcast %12 : vector<1x32xf32> to vector<8x32xf32>
    %36 = arith.addf %34, %35 : vector<8x32xf32>
    %cst_16 = arith.constant 1.000000e+00 : f32
    %37 = vector.broadcast %cst_16 : f32 to vector<8x32xf32>
    %38 = arith.addf %37, %3 : vector<8x32xf32>
    %39 = arith.mulf %36, %38 : vector<8x32xf32>
    %40 = arith.addf %39, %5 : vector<8x32xf32>
    %c0_17 = arith.constant 0 : index
    %c0_18 = arith.constant 0 : index
    %41 = vector.load %arg3[%c0_17, %c0_18] : memref<32x96xf32, #tpu.memory_space<vmem>>, vector<32x96xf32>
    %cst_19 = arith.constant dense<0.000000e+00> : vector<8x96xf32>
    %42 = tpu.matmul %40, %41, %cst_19 {dimension_numbers = #tpu.dot_dimension_numbers<[1], [0], [0], [1], [0, 0, 1, 1], [], []>} : vector<8x32xf32>, vector<32x96xf32>, vector<8x96xf32> -> vector<8x96xf32>
    %c0_20 = arith.constant 0 : index
    %c0_21 = arith.constant 0 : index
    %43 = vector.load %arg4[%c0_20, %c0_21] : memref<1x96xf32, #tpu.memory_space<vmem>>, vector<1x96xf32>
    %44 = vector.broadcast %43 : vector<1x96xf32> to vector<8x96xf32>
    %45 = arith.addf %42, %44 : vector<8x96xf32>
    %46 = vector.extract_strided_slice %45 {offsets = [0, 0], sizes = [8, 8], strides = [1, 1]} : vector<8x96xf32> to vector<8x8xf32>
    %47 = vector.extract_strided_slice %45 {offsets = [0, 32], sizes = [8, 8], strides = [1, 1]} : vector<8x96xf32> to vector<8x8xf32>
    %48 = vector.extract_strided_slice %45 {offsets = [0, 64], sizes = [8, 8], strides = [1, 1]} : vector<8x96xf32> to vector<8x8xf32>
    %cst_22 = arith.constant dense<0.000000e+00> : vector<8x8xf32>
    %49 = tpu.matmul %46, %47, %cst_22 {dimension_numbers = #tpu.dot_dimension_numbers<[1], [1], [0], [0], [0, 0, 1, 0], [], []>} : vector<8x8xf32>, vector<8x8xf32>, vector<8x8xf32> -> vector<8x8xf32>
    %cst_23 = arith.constant 0.353553385 : f32
    %50 = vector.broadcast %cst_23 : f32 to vector<8x8xf32>
    %51 = arith.mulf %49, %50 : vector<8x8xf32>
    %cst_24 = arith.constant dense<0xFF800000> : vector<8xf32>
    %52 = vector.multi_reduction <maximumf>, %51, %cst_24 [1] : vector<8x8xf32> to vector<8xf32>
    %53 = vector.shape_cast %52 : vector<8xf32> to vector<8x1xf32>
    %54 = vector.broadcast %53 : vector<8x1xf32> to vector<8x8xf32>
    %55 = arith.subf %51, %54 : vector<8x8xf32>
    %56 = math.exp %55 : vector<8x8xf32>
    %cst_25 = arith.constant dense<0.000000e+00> : vector<8xf32>
    %57 = vector.multi_reduction <add>, %56, %cst_25 [1] : vector<8x8xf32> to vector<8xf32>
    %58 = vector.shape_cast %57 : vector<8xf32> to vector<8x1xf32>
    %59 = tpu.reciprocal %58 {approx = true} : vector<8x1xf32> -> vector<8x1xf32>
    %60 = vector.broadcast %59 : vector<8x1xf32> to vector<8x8xf32>
    %61 = arith.mulf %56, %60 : vector<8x8xf32>
    %cst_26 = arith.constant dense<0.000000e+00> : vector<8x8xf32>
    %62 = tpu.matmul %61, %48, %cst_26 {dimension_numbers = #tpu.dot_dimension_numbers<[1], [0], [0], [1], [0, 0, 1, 1], [], []>} : vector<8x8xf32>, vector<8x8xf32>, vector<8x8xf32> -> vector<8x8xf32>
    %63 = vector.extract_strided_slice %45 {offsets = [0, 8], sizes = [8, 8], strides = [1, 1]} : vector<8x96xf32> to vector<8x8xf32>
    %64 = vector.extract_strided_slice %45 {offsets = [0, 40], sizes = [8, 8], strides = [1, 1]} : vector<8x96xf32> to vector<8x8xf32>
    %65 = vector.extract_strided_slice %45 {offsets = [0, 72], sizes = [8, 8], strides = [1, 1]} : vector<8x96xf32> to vector<8x8xf32>
    %cst_27 = arith.constant dense<0.000000e+00> : vector<8x8xf32>
    %66 = tpu.matmul %63, %64, %cst_27 {dimension_numbers = #tpu.dot_dimension_numbers<[1], [1], [0], [0], [0, 0, 1, 0], [], []>} : vector<8x8xf32>, vector<8x8xf32>, vector<8x8xf32> -> vector<8x8xf32>
    %cst_28 = arith.constant 0.353553385 : f32
    %67 = vector.broadcast %cst_28 : f32 to vector<8x8xf32>
    %68 = arith.mulf %66, %67 : vector<8x8xf32>
    %cst_29 = arith.constant dense<0xFF800000> : vector<8xf32>
    %69 = vector.multi_reduction <maximumf>, %68, %cst_29 [1] : vector<8x8xf32> to vector<8xf32>
    %70 = vector.shape_cast %69 : vector<8xf32> to vector<8x1xf32>
    %71 = vector.broadcast %70 : vector<8x1xf32> to vector<8x8xf32>
    %72 = arith.subf %68, %71 : vector<8x8xf32>
    %73 = math.exp %72 : vector<8x8xf32>
    %cst_30 = arith.constant dense<0.000000e+00> : vector<8xf32>
    %74 = vector.multi_reduction <add>, %73, %cst_30 [1] : vector<8x8xf32> to vector<8xf32>
    %75 = vector.shape_cast %74 : vector<8xf32> to vector<8x1xf32>
    %76 = tpu.reciprocal %75 {approx = true} : vector<8x1xf32> -> vector<8x1xf32>
    %77 = vector.broadcast %76 : vector<8x1xf32> to vector<8x8xf32>
    %78 = arith.mulf %73, %77 : vector<8x8xf32>
    %cst_31 = arith.constant dense<0.000000e+00> : vector<8x8xf32>
    %79 = tpu.matmul %78, %65, %cst_31 {dimension_numbers = #tpu.dot_dimension_numbers<[1], [0], [0], [1], [0, 0, 1, 1], [], []>} : vector<8x8xf32>, vector<8x8xf32>, vector<8x8xf32> -> vector<8x8xf32>
    %80 = vector.extract_strided_slice %45 {offsets = [0, 16], sizes = [8, 8], strides = [1, 1]} : vector<8x96xf32> to vector<8x8xf32>
    %81 = vector.extract_strided_slice %45 {offsets = [0, 48], sizes = [8, 8], strides = [1, 1]} : vector<8x96xf32> to vector<8x8xf32>
    %82 = vector.extract_strided_slice %45 {offsets = [0, 80], sizes = [8, 8], strides = [1, 1]} : vector<8x96xf32> to vector<8x8xf32>
    %cst_32 = arith.constant dense<0.000000e+00> : vector<8x8xf32>
    %83 = tpu.matmul %80, %81, %cst_32 {dimension_numbers = #tpu.dot_dimension_numbers<[1], [1], [0], [0], [0, 0, 1, 0], [], []>} : vector<8x8xf32>, vector<8x8xf32>, vector<8x8xf32> -> vector<8x8xf32>
    %cst_33 = arith.constant 0.353553385 : f32
    %84 = vector.broadcast %cst_33 : f32 to vector<8x8xf32>
    %85 = arith.mulf %83, %84 : vector<8x8xf32>
    %cst_34 = arith.constant dense<0xFF800000> : vector<8xf32>
    %86 = vector.multi_reduction <maximumf>, %85, %cst_34 [1] : vector<8x8xf32> to vector<8xf32>
    %87 = vector.shape_cast %86 : vector<8xf32> to vector<8x1xf32>
    %88 = vector.broadcast %87 : vector<8x1xf32> to vector<8x8xf32>
    %89 = arith.subf %85, %88 : vector<8x8xf32>
    %90 = math.exp %89 : vector<8x8xf32>
    %cst_35 = arith.constant dense<0.000000e+00> : vector<8xf32>
    %91 = vector.multi_reduction <add>, %90, %cst_35 [1] : vector<8x8xf32> to vector<8xf32>
    %92 = vector.shape_cast %91 : vector<8xf32> to vector<8x1xf32>
    %93 = tpu.reciprocal %92 {approx = true} : vector<8x1xf32> -> vector<8x1xf32>
    %94 = vector.broadcast %93 : vector<8x1xf32> to vector<8x8xf32>
    %95 = arith.mulf %90, %94 : vector<8x8xf32>
    %cst_36 = arith.constant dense<0.000000e+00> : vector<8x8xf32>
    %96 = tpu.matmul %95, %82, %cst_36 {dimension_numbers = #tpu.dot_dimension_numbers<[1], [0], [0], [1], [0, 0, 1, 1], [], []>} : vector<8x8xf32>, vector<8x8xf32>, vector<8x8xf32> -> vector<8x8xf32>
    %97 = vector.extract_strided_slice %45 {offsets = [0, 24], sizes = [8, 8], strides = [1, 1]} : vector<8x96xf32> to vector<8x8xf32>
    %98 = vector.extract_strided_slice %45 {offsets = [0, 56], sizes = [8, 8], strides = [1, 1]} : vector<8x96xf32> to vector<8x8xf32>
    %99 = vector.extract_strided_slice %45 {offsets = [0, 88], sizes = [8, 8], strides = [1, 1]} : vector<8x96xf32> to vector<8x8xf32>
    %cst_37 = arith.constant dense<0.000000e+00> : vector<8x8xf32>
    %100 = tpu.matmul %97, %98, %cst_37 {dimension_numbers = #tpu.dot_dimension_numbers<[1], [1], [0], [0], [0, 0, 1, 0], [], []>} : vector<8x8xf32>, vector<8x8xf32>, vector<8x8xf32> -> vector<8x8xf32>
    %cst_38 = arith.constant 0.353553385 : f32
    %101 = vector.broadcast %cst_38 : f32 to vector<8x8xf32>
    %102 = arith.mulf %100, %101 : vector<8x8xf32>
    %cst_39 = arith.constant dense<0xFF800000> : vector<8xf32>
    %103 = vector.multi_reduction <maximumf>, %102, %cst_39 [1] : vector<8x8xf32> to vector<8xf32>
    %104 = vector.shape_cast %103 : vector<8xf32> to vector<8x1xf32>
    %105 = vector.broadcast %104 : vector<8x1xf32> to vector<8x8xf32>
    %106 = arith.subf %102, %105 : vector<8x8xf32>
    %107 = math.exp %106 : vector<8x8xf32>
    %cst_40 = arith.constant dense<0.000000e+00> : vector<8xf32>
    %108 = vector.multi_reduction <add>, %107, %cst_40 [1] : vector<8x8xf32> to vector<8xf32>
    %109 = vector.shape_cast %108 : vector<8xf32> to vector<8x1xf32>
    %110 = tpu.reciprocal %109 {approx = true} : vector<8x1xf32> -> vector<8x1xf32>
    %111 = vector.broadcast %110 : vector<8x1xf32> to vector<8x8xf32>
    %112 = arith.mulf %107, %111 : vector<8x8xf32>
    %cst_41 = arith.constant dense<0.000000e+00> : vector<8x8xf32>
    %113 = tpu.matmul %112, %99, %cst_41 {dimension_numbers = #tpu.dot_dimension_numbers<[1], [0], [0], [1], [0, 0, 1, 1], [], []>} : vector<8x8xf32>, vector<8x8xf32>, vector<8x8xf32> -> vector<8x8xf32>
    %114 = tpu.concatenate %62, %79, %96, %113 in 1 : vector<8x8xf32>, vector<8x8xf32>, vector<8x8xf32>, vector<8x8xf32> -> vector<8x32xf32>
    %c0_42 = arith.constant 0 : index
    %c0_43 = arith.constant 0 : index
    %115 = vector.load %arg5[%c0_42, %c0_43] : memref<32x32xf32, #tpu.memory_space<vmem>>, vector<32x32xf32>
    %cst_44 = arith.constant dense<0.000000e+00> : vector<8x32xf32>
    %116 = tpu.matmul %114, %115, %cst_44 {dimension_numbers = #tpu.dot_dimension_numbers<[1], [0], [0], [1], [0, 0, 1, 1], [], []>} : vector<8x32xf32>, vector<32x32xf32>, vector<8x32xf32> -> vector<8x32xf32>
    %117 = arith.addf %1, %116 : vector<8x32xf32>
    %c0_45 = arith.constant 0 : index
    %c0_46 = arith.constant 0 : index
    %118 = vector.load %arg6[%c0_45, %c0_46] : memref<1x32xf32, #tpu.memory_space<vmem>>, vector<1x32xf32>
    %119 = vector.broadcast %118 : vector<1x32xf32> to vector<8x32xf32>
    %120 = arith.addf %117, %119 : vector<8x32xf32>
    %cst_47 = arith.constant dense<0.000000e+00> : vector<8xf32>
    %121 = vector.multi_reduction <add>, %120, %cst_47 [1] : vector<8x32xf32> to vector<8xf32>
    %122 = vector.shape_cast %121 : vector<8xf32> to vector<8x1xf32>
    %cst_48 = arith.constant 3.200000e+01 : f32
    %123 = vector.broadcast %cst_48 : f32 to vector<8x1xf32>
    %124 = arith.divf %122, %123 : vector<8x1xf32>
    %125 = vector.broadcast %124 : vector<8x1xf32> to vector<8x32xf32>
    %126 = arith.subf %120, %125 : vector<8x32xf32>
    %127 = arith.mulf %126, %126 : vector<8x32xf32>
    %cst_49 = arith.constant dense<0.000000e+00> : vector<8xf32>
    %128 = vector.multi_reduction <add>, %127, %cst_49 [1] : vector<8x32xf32> to vector<8xf32>
    %129 = vector.shape_cast %128 : vector<8xf32> to vector<8x1xf32>
    %cst_50 = arith.constant 3.200000e+01 : f32
    %130 = vector.broadcast %cst_50 : f32 to vector<8x1xf32>
    %131 = arith.divf %129, %130 : vector<8x1xf32>
    %132 = vector.broadcast %124 : vector<8x1xf32> to vector<8x32xf32>
    %133 = arith.subf %120, %132 : vector<8x32xf32>
    %cst_51 = arith.constant 9.99999974E-6 : f32
    %134 = vector.broadcast %cst_51 : f32 to vector<8x1xf32>
    %135 = arith.addf %131, %134 : vector<8x1xf32>
    %136 = math.rsqrt %135 : vector<8x1xf32>
    %137 = vector.broadcast %136 : vector<8x1xf32> to vector<8x32xf32>
    %138 = arith.mulf %133, %137 : vector<8x32xf32>
    %139 = vector.broadcast %13 : vector<1x32xf32> to vector<8x32xf32>
    %140 = arith.mulf %138, %139 : vector<8x32xf32>
    %141 = vector.broadcast %14 : vector<1x32xf32> to vector<8x32xf32>
    %142 = arith.addf %140, %141 : vector<8x32xf32>
    %cst_52 = arith.constant 1.000000e+00 : f32
    %143 = vector.broadcast %cst_52 : f32 to vector<8x32xf32>
    %144 = arith.addf %143, %7 : vector<8x32xf32>
    %145 = arith.mulf %142, %144 : vector<8x32xf32>
    %146 = arith.addf %145, %9 : vector<8x32xf32>
    %c0_53 = arith.constant 0 : index
    %c0_54 = arith.constant 0 : index
    %147 = vector.load %arg7[%c0_53, %c0_54] : memref<32x128xf32, #tpu.memory_space<vmem>>, vector<32x128xf32>
    %cst_55 = arith.constant dense<0.000000e+00> : vector<8x128xf32>
    %148 = tpu.matmul %146, %147, %cst_55 {dimension_numbers = #tpu.dot_dimension_numbers<[1], [0], [0], [1], [0, 0, 1, 1], [], []>} : vector<8x32xf32>, vector<32x128xf32>, vector<8x128xf32> -> vector<8x128xf32>
    %c0_56 = arith.constant 0 : index
    %c0_57 = arith.constant 0 : index
    %149 = vector.load %arg8[%c0_56, %c0_57] : memref<1x128xf32, #tpu.memory_space<vmem>>, vector<1x128xf32>
    %150 = vector.broadcast %149 : vector<1x128xf32> to vector<8x128xf32>
    %151 = arith.addf %148, %150 : vector<8x128xf32>
    %cst_58 = arith.constant 5.000000e-01 : f32
    %152 = vector.broadcast %cst_58 : f32 to vector<8x128xf32>
    %153 = arith.mulf %152, %151 : vector<8x128xf32>
    %cst_59 = arith.constant 0.707106769 : f32
    %154 = vector.broadcast %cst_59 : f32 to vector<8x128xf32>
    %155 = arith.mulf %151, %154 : vector<8x128xf32>
    %156 = math.erf %155 : vector<8x128xf32>
    %cst_60 = arith.constant 1.000000e+00 : f32
    %157 = vector.broadcast %cst_60 : f32 to vector<8x128xf32>
    %158 = arith.addf %157, %156 : vector<8x128xf32>
    %159 = arith.mulf %153, %158 : vector<8x128xf32>
    %c0_61 = arith.constant 0 : index
    %c0_62 = arith.constant 0 : index
    %160 = vector.load %arg9[%c0_61, %c0_62] : memref<128x32xf32, #tpu.memory_space<vmem>>, vector<128x32xf32>
    %cst_63 = arith.constant dense<0.000000e+00> : vector<8x32xf32>
    %161 = tpu.matmul %159, %160, %cst_63 {dimension_numbers = #tpu.dot_dimension_numbers<[1], [0], [0], [1], [0, 0, 1, 1], [], []>} : vector<8x128xf32>, vector<128x32xf32>, vector<8x32xf32> -> vector<8x32xf32>
    %162 = arith.addf %120, %161 : vector<8x32xf32>
    %c0_64 = arith.constant 0 : index
    %c0_65 = arith.constant 0 : index
    %163 = vector.load %arg10[%c0_64, %c0_65] : memref<1x32xf32, #tpu.memory_space<vmem>>, vector<1x32xf32>
    %164 = vector.broadcast %163 : vector<1x32xf32> to vector<8x32xf32>
    %165 = arith.addf %162, %164 : vector<8x32xf32>
    %c0_66 = arith.constant 0 : index
    %c0_67 = arith.constant 0 : index
    %166 = vector.load %arg11[%c0_66, %c0_67] : memref<8x32xf32, #tpu.memory_space<vmem>>, vector<8x32xf32>
    tpu.vector_store %arg11[%c0_66, %c0_67], %165 {strides = array<i32>} : memref<8x32xf32, #tpu.memory_space<vmem>>, vector<8x32xf32>,
    return
  }
  func.func @transform_0(%arg0: i32) -> (i32, i32, i32) {
    %c0_i32 = arith.constant 0 : i32
    %c0_i32_0 = arith.constant 0 : i32
    %c0_i32_1 = arith.constant 0 : i32
    return %c0_i32, %arg0, %c0_i32_0 : i32, i32, i32
  }
  func.func @transform_1(%arg0: i32) -> (i32, i32) {
    %c0_i32 = arith.constant 0 : i32
    %c0_i32_0 = arith.constant 0 : i32
    %c0_i32_1 = arith.constant 0 : i32
    return %c0_i32, %c0_i32_0 : i32, i32
  }
  func.func @transform_2(%arg0: i32) -> (i32, i32) {
    %c0_i32 = arith.constant 0 : i32
    %c0_i32_0 = arith.constant 0 : i32
    %c0_i32_1 = arith.constant 0 : i32
    return %c0_i32, %c0_i32_0 : i32, i32
  }
  func.func @transform_3(%arg0: i32) -> (i32, i32) {
    %c0_i32 = arith.constant 0 : i32
    %c0_i32_0 = arith.constant 0 : i32
    %c0_i32_1 = arith.constant 0 : i32
    return %c0_i32, %c0_i32_0 : i32, i32
  }
  func.func @transform_4(%arg0: i32) -> (i32, i32) {
    %c0_i32 = arith.constant 0 : i32
    %c0_i32_0 = arith.constant 0 : i32
    %c0_i32_1 = arith.constant 0 : i32
    return %c0_i32, %c0_i32_0 : i32, i32
  }
  func.func @transform_5(%arg0: i32) -> (i32, i32) {
    %c0_i32 = arith.constant 0 : i32
    %c0_i32_0 = arith.constant 0 : i32
    %c0_i32_1 = arith.constant 0 : i32
    return %c0_i32, %c0_i32_0 : i32, i32
  }
  func.func @transform_6(%arg0: i32) -> (i32, i32) {
    %c0_i32 = arith.constant 0 : i32
    %c0_i32_0 = arith.constant 0 : i32
    %c0_i32_1 = arith.constant 0 : i32
    return %c0_i32, %c0_i32_0 : i32, i32
  }
  func.func @transform_7(%arg0: i32) -> (i32, i32) {
    %c0_i32 = arith.constant 0 : i32
    %c0_i32_0 = arith.constant 0 : i32
    %c0_i32_1 = arith.constant 0 : i32
    return %c0_i32, %c0_i32_0 : i32, i32
  }
  func.func @transform_8(%arg0: i32) -> (i32, i32) {
    %c0_i32 = arith.constant 0 : i32
    %c0_i32_0 = arith.constant 0 : i32
    %c0_i32_1 = arith.constant 0 : i32
    return %c0_i32, %c0_i32_0 : i32, i32
  }
  func.func @transform_9(%arg0: i32) -> (i32, i32) {
    %c0_i32 = arith.constant 0 : i32
    %c0_i32_0 = arith.constant 0 : i32
    %c0_i32_1 = arith.constant 0 : i32
    return %c0_i32, %c0_i32_0 : i32, i32
  }
  func.func @transform_10(%arg0: i32) -> (i32, i32) {
    %c0_i32 = arith.constant 0 : i32
    %c0_i32_0 = arith.constant 0 : i32
    return %arg0, %c0_i32 : i32, i32
  }
}

</mosaic_0001>

<bundles_post_ra>
// kernel: tpu_custom_call.1
= control target key start
LH: loop header
LB: loop body
LE: loop exit
PB: predicated region body
PF: predicated region fallthrough
CT: control target
= control target key end

     0   :  { %15 = vsyncpa [#allocation4], 0  ;;  %s2471_s0 = inlined_call_operand.vmem [shape: f32[5,16,32], index: 0, kind: input, shape index: {}]   ;;  %s2472_s1 = inlined_call_operand.hbm [shape: f32[4,32], index: 1, kind: input, shape index: {}]   ;;  %s2473_s2 = inlined_call_operand.vmem [shape: f32[32,96], index: 2, kind: input, shape index: {}]   ;;  %s2474_s3 = inlined_call_operand.vmem [shape: f32[1,96], index: 3, kind: input, shape index: {}]   ;;  %s2475_s4 = inlined_call_operand.vmem [shape: f32[32,32], index: 4, kind: input, shape index: {}]   ;;  %s2476_s5 = inlined_call_operand.vmem [shape: f32[1,32], index: 5, kind: input, shape index: {}]   ;;  %s2477_s6 = inlined_call_operand.vmem [shape: f32[32,128], index: 6, kind: input, shape index: {}]   ;;  %s2478_s7 = inlined_call_operand.vmem [shape: f32[1,128], index: 7, kind: input, shape index: {}]   ;;  %s2479_s8 = inlined_call_operand.vmem [shape: f32[128,32], index: 8, kind: input, shape index: {}]   ;;  %s2480_s9 = inlined_call_operand.vmem [shape: f32[1,32], index: 9, kind: input, shape index: {}]   ;;  %s2481_s10 = inlined_call_operand.hbm [shape: f32[16,32], index: 10, kind: output, shape index: {}]  }
   0x1   :  { %16 = vsyncpa [#allocation5], 0 }
   0x2   :  { %18 = vsyncpa [#allocation5 + $0x1], 0  ;;  %s2106_s13 = smov 0   ;;  %s2108_s14 = smov 0  }
   0x3   :  { %s2110_s15 = smov 0   ;;  %s2112_s16 = smov 0  }
   0x4 LB: > { %s2127_s17 = sadd.s32 4294967295, %s2030_s16   ;;  %s1612_s18 = sadd.s32 4294967294, %s2030_s16   ;;  %s2030_s16 = sphi %s2112_s16, %s2501_s16   ;;  %s2026_s15 = sphi %s2110_s15, %s2500_s15   ;;  %s2022_s14 = sphi %s2108_s14, %s2499_s14   ;;  %s2018_s13 = sphi %s2106_s13, %s2498_s13  }
   0x5   : > { %s2131_s19 = sadd.s32 1, %s2030_s16   ;;  %s31_s20 = sadd.s32 1, %s2026_s15 }
   0x6   : > { %s28_s21 = ssub.s32 %s2030_s16, %s2131_s19  ;;  %p38_p0 = scmp.ne.s32.totalorder %s2026_s15, %s2022_s14 }
   0x7   : > { %p29_p1 = scmp.eq.s32.totalorder %s28_s21, 0  ;;  %p39_p2 = scmp.eq.s32.totalorder %s2030_s16, 0 }
   0x8   : > { %p257_p3 = scmp.eq.s32.totalorder %s2127_s17, 1  ;;  %p262_p4 = scmp.ne.s32.totalorder %s2022_s14, %s2018_s13 }
   0x9   : > { %s2143_s22 = scalar_select %p29_p1, %s2026_s15, %s31_s20  }
   0xa   : > { %p2145_p5 = por %p39_p2, %p38_p0  ;;  %p2149_p6 = por %p257_p3, %p38_p0 }
   0xb   : > { %2485 = sst [smem:[#allocation9_spill]] %s2143_s22  ;;  %p263_p7 = scmp.eq.s32.totalorder %s1612_s18, 1 }
   0xc   : > { %s2486_s23 = scalar_select %p2145_p5, 1, 0 }
   0xd   : > { %s2487_s24 = scalar_select %p2149_p6, 1, 0 }
   0xe   : > { %p1613_p8 = scmp.ge.s32.totalorder %s2030_s16, 1  ;;  %p270_p9 = scmp.lt.s32.totalorder %s2030_s16, 3 }
   0xf   : > { %p2155_p10 = por %p263_p7, %p262_p4  ;;  %p2482_p11 = scmp.eq.s32.totalorder %s2127_s17, 0 }
  0x10   : > { %p2160_p12 = pnand %p1613_p8, %p270_p9  ;;  %s2032_s27 = smov [#allocation3]  }
  0x11   : > { %s2488_s25 = scalar_select %p2155_p10, 1, 0 }
  0x12   : > { %s2489_s26 = scalar_select %p2160_p12, 1, 0 }
  0x13   : > { %s283_s28 = sshll.u32 %s2032_s27, 4  ;;  %p1853_p13 = pneg %p2160_p12  ;;  %s284_s28 = int_to_ptr.vmem [resolvable:$true] %s283_s28 }
  0x14   : > { %s1936_s12 = scalar_lea.hbm %s2472_s1, 64 }
  0x15   : > { %p2168_p0 = pnand %p2482_p11, %p1853_p13  ;;  %p1937_p1 = scmp.ne.s32.totalorder %s2472_s1, %s1936_s12 }
  0x16   : > { %p1943_p7 = scmp.lt.u32.totalorder %s1936_s12, %s2472_s1 }
  0x17   : > { %p1938_p2 = pneg %p2168_p0 }
  0x19   : > { %p1939_p3 = pnand %p1938_p2, %p1937_p1 }
  0x1b   : > { %p1940_p4 = pneg %p1939_p3 }
  0x1d   : > { %p1945_p8 = pnand %p1943_p7, %p1940_p4 }
  0x1f   : > { %1948 = shalt.err (!%p1945_p8)
}
  0x20   : > { %s1949_s22 = scalar_lea.vmem %s284_s28, 64  ;;  %p1957_p10 = scmp.lt.s32.totalorder %s284_s28, %s284_s28 }
  0x21   : > { %p1950_p9 = scmp.ne.s32.totalorder %s284_s28, %s1949_s22  ;;  %p1958_p6 = scmp.lt.s32.totalorder %s1949_s22, %s1949_s22 }
  0x23   : > { %p1952_p13 = pnand %p1950_p9, %p1938_p2  ;;  %p1959_p12 = por %p1958_p6, %p1957_p10 }
  0x25   : > { %p1953_p11 = pneg %p1952_p13 }
  0x27   : > { %p1960_p5 = pnand %p1959_p12, %p1953_p11 }
  0x29   : > { %1963 = shalt.err (!%p1960_p5)
}
  0x2a   : > { %1856 = dma.hbm_to_vmem [thread:$0]  (!%p2168_p0), %s2472_s1, 64, %s284_s28, [#allocation4]  }
  0x2b   : > { %p1615_p1 = scmp.ge.s32.totalorder %s2030_s16, 2 }
  0x2c   : > { %p2491_p3 = scmp.ne.s32.totalorder (!%p1615_p1), %s2486_s23, 0 }
  0x2d   : > { %314 = sbr.rel (%p1615_p1) target bundleno = 59 (0x3b), region = 52 }
  0x34   : > { %317 = sbr.rel (!%p2491_p3) target bundleno = 59 (0x3b), region = 56  ;;  %s319_s22 = sand.u32 (%p2491_p3), 1, %s2026_s15  }
  0x35   : > { %s1616_s12 = sshll.u32 (%p2491_p3), %s2030_s16, 3  ;;  %s1845_s18 = smul.u32 (%p2491_p3), 40, %s319_s22 }
  0x36   : > { %s323_s29 = scalar_lea.vmem (%p2491_p3), %s2471_s0, %s1616_s12 }
  0x37   : > { %v359_v0 = vld [vmem:[%s323_s29] sm:$0xff] (%p2491_p3)  ;;  %v361_v1 = vld [vmem:[%s323_s29 + $0x10] sm:$0xff] (%p2491_p3)  ;;  %s321_s28 = scalar_lea.vmem (%p2491_p3), [#allocation2], %s1845_s18 }
  0x38   : > { %v363_v2 = vld [vmem:[%s323_s29 + $0x20] sm:$0xff] (%p2491_p3)  ;;  %v365_v3 = vld [vmem:[%s323_s29 + $0x30] sm:$0xff] (%p2491_p3)  ;;  %360 = vst [vmem:[%s321_s28] sm:$0xff] (%p2491_p3), %v359_v0  ;;  %362 = vst [vmem:[%s321_s28 + $0x8] sm:$0xff] (%p2491_p3), %v361_v1 }
  0x39   : > { %v367_v4 = vld [vmem:[%s323_s29 + $0x40] sm:$0xff] (%p2491_p3)  ;;  %364 = vst [vmem:[%s321_s28 + $0x10] sm:$0xff] (%p2491_p3), %v363_v2  ;;  %366 = vst [vmem:[%s321_s28 + $0x18] sm:$0xff] (%p2491_p3), %v365_v3 }
  0x3a   : > { %368 = vst [vmem:[%s321_s28 + $0x20] sm:$0xff] (%p2491_p3), %v367_v4 }
  0x3b PF: > { %p2492_p5 = scmp.ne.s32.totalorder %s2489_s26, 0 }
  0x3c   : > { %s2201_s23 = sand.u32 (!%p2492_p5), 1, %s2022_s14   ;;  %p2493_p6 = scmp.eq.s32.totalorder (!%p2492_p5), %s2127_s17, 0 }
  0x3d   : > { %377 = sbr.rel (%p2492_p5) target bundleno = 2586 (0xa1a), region = 94 }
  0x3e   : > { %s1846_s27 = smul.u32 (!%p2492_p5), 40, %s2201_s23 }
  0x40   : > { %s2204_s30 = scalar_lea.vmem (!%p2492_p5), [#allocation2], %s1846_s27 }
  0x44   : > { %2009 = dma.done.wait (%p2493_p6), [#allocation4], 64   ;;  %p2494_p10 = pmov %p2493_p6 }
  0x45   : > { %vm431_vm0 = vcmask 261120   ;;  %v2211_v5 = vld [vmem:[%s2204_s30] sm:$0xff]  ;;  %v461_v14 = vld [vmem:[%s2473_s2 + $0x10] sm:$0xff]  ;;  %v2033_v15 = vmov 0.0|0.0   ;;  %v462_v17 = vld [vmem:[%s2473_s2 + $0x18] sm:$0xff]  ;;  %vm2034_vm1 = vmmov 0   ;;  %v446_v22 = vlaneseq }
  0x46   : > { %2011 = vsyncadd (%p2494_p10), [#allocation4], 4294967232  ;;  %v432_v6 = vsel %vm431_vm0, %v2211_v5, 0.0  ;;  %v459_v12 = vld [vmem:[%s2473_s2] sm:$0xff]  ;;  %v460_v13 = vld [vmem:[%s2473_s2 + $0x8] sm:$0xff]  ;;  %1803 = vmatprep.subr.bf16.mxu1 %v2033_v15  ;;  %v2035_v18 = vmov 0.0   ;;  %v1807_v19 = vpack.c.bf16 %v462_v17, %v461_v14 }
  0x47   : > { %433 = vadd.xlane.f32.xlu0 %v432_v6  ;;  %v1804_v16 = vpack.c.bf16 %v460_v13, %v459_v12  ;;  %1703 = vmatprep.mubr.msk.f32.mxu1 %vm2034_vm1, %v2035_v18  ;;  %v2237_v24 = vshrl.u32 %v446_v22, 7  ;;  %v2240_v26 = vld [vmem:[#allocation3] sm:$0xf]  ;;  %v1624_v39 = vld [vmem:[%s2474_s3] ss:$0 sm:$0xff]  ;;  %s2036_s26 = smov 120  }
  0x48   : > { %1716 = vmatprep.subr.mxu0 %v2035_v18  ;;  %1718 = vmatprep.mubr.msk.f32.mxu0 %vm2034_vm1, %v2035_v18  ;;  %v1620_v30 = vld [vmem:[%s2204_s30 + $0x8] sm:$0xff]  ;;  %v1621_v36 = vld [vmem:[%s2204_s30 + $0x10] sm:$0xff]  ;;  %s2037_s11 = smov 96   ;;  %s2038_s22 = smov 88   ;;  %vm546_vm2 = vcmask 64512   ;;  %vm1220_vm3 = vcmask 130048  }
  0x49   : > { %1805 = vmatpush3.bf16.msra.mxu1 %v1804_v16  ;;  %v448_v25 = vsub.s32 0, %v2237_v24  ;;  %v453_v27 = vsub.s32 1, %v2237_v24  ;;  %v456_v34 = vadd.f32 1.0, %v1620_v30  ;;  %s2039_s12 = smov 80   ;;  %s2040_s18 = smov 112   ;;  %vm1222_vm4 = vcmask 195584  }
  0x4a   : > { %1806 = vmatprep.subr.bf16.mxu1 %v2033_v15  ;;  %s2041_s20 = smov 72   ;;  %s2042_s21 = smov 104  }
  0x4b   : > { %v449_v28 = vrot.slane %v2240_v26, %v448_v25  ;;  %v454_v32 = vrot.slane %v2240_v26, %v453_v27  ;;  %s2043_s29 = smov 64   ;;  %s2044_s28 = smov 48  }
  0x4c   : > { %s2045_s27 = smov 40   ;;  %p2495_p12 = scmp.ne.s32.totalorder %s2487_s24, 0 }
  0x4d   : > { %1808 = vmatpush3.bf16.msra.mxu1 %v1807_v19 }
  0x4e   : > { %1706 = vmatprep.subr.mxu1 %v2035_v18 }
  0xd4   : > { %v434_v7 = vpop.xlane.xlu0 %433 }
  0xd5   : > { %v436_v8 = vmul.f32 0.03125, %v434_v7 }
  0xd7   : > { %v437_v9 = vsub.f32 %v2211_v5, %v436_v8 }
  0xd9   : > { %v438_v10 = vmul.f32 %v437_v9, %v437_v9 }
  0xdb   : > { %v439_v11 = vsel %vm431_vm0, %v438_v10, 0.0 }
  0xdc   : > { %440 = vadd.xlane.f32.xlu0 %v439_v11 }
 0x169   : > { %v441_v20 = vpop.xlane.xlu0 %440 }
 0x16a   : > { %v442_v21 = vmul.f32 0.03125, %v441_v20 }
 0x16c   : > { %v443_v23 = vadd.f32 1e-05, %v442_v21 }
 0x16e   : > { %1914 = vrsqrt.f32 %v443_v23 }
 0x178   : > { %v1915_v29 = vpop.eup %1914 }
 0x179   : > { %v445_v31 = vmul.f32 %v1915_v29, %v437_v9 }
 0x17b   : > { %v450_v33 = vmul.f32 %v449_v28, %v445_v31 }
 0x17d   : > { %v455_v35 = vadd.f32 %v454_v32, %v450_v33 }
 0x17f   : > { %v457_v37 = vmul.f32 %v456_v34, %v455_v35 }
 0x181   : > { %v458_v38 = vadd.f32 %v1621_v36, %v457_v37 }
 0x183   : > { %1704 = vmatmul.mubr.msk.f32.vlgmr.msra.gmra.mrb[0].mxu1 %vm431_vm0, %v458_v38 }
 0x184   : > { %1708 = vmatprep.mubr.msk.f32.mxu1 %vm2034_vm1, %v2035_v18 }
 0x256   : > { %v539_v40 = vpop.f32.mrb[0].mxu1 }
 0x257   : > { %v2253_v41 = vadd.f32 %v1624_v39, %v539_v40  ;;  %v1705_v42 = vpop.f32.mrb[1].mxu1 }
 0x259   : > { %709 = vrot.lane.b32.xlu0 %v2253_v41, %s2036_s26  ;;  %544 = vrot.lane.b32.xlu1 %v2253_v41, %s2037_s11  ;;  %s2046_s26 = smov 56   ;;  %s2049_s11 = smov 24  }
 0x25d   : > { %711 = vrot.lane.b32.xlu1 %v2253_v41, %s2038_s22  ;;  %s1522_s22 = scalar_lea.sflag [#allocation5], %s2201_s23 }
 0x261   : > { %877 = vrot.lane.b32.xlu1 %v2253_v41, %s2039_s12  ;;  %s2050_s12 = smov [#allocation6]  }
 0x265   : > { %875 = vrot.lane.b32.xlu1 %v2253_v41, %s2040_s18  ;;  %s1619_s18 = sshll.u32 %s2201_s23, 3 }
 0x269   : > { %1043 = vrot.lane.b32.xlu1 %v2253_v41, %s2041_s20 }
 0x26d   : > { %1041 = vrot.lane.b32.xlu1 %v2253_v41, %s2042_s21 }
 0x2cb   : > { %v545_v43 = vpop.permute.xlu1 %544  ;;  %v710_v45 = vpop.permute.xlu0 %709 }
 0x2cc   : > { %1707 = vmatpush3.xpose.msk.msra.mxu1 %vm546_vm2, %v545_v43  ;;  %v1224_v43 = vld [vmem:[%s2475_s4] sm:$0xff] }
 0x2cd   : > { %1711 = vmatprep.subr.mxu1 %v2035_v18 }
 0x2cf   : > { %1709 = vmatmul.mubr.msk.f32.vlgmr.msra.gmra.mrb[2].mxu1 %vm546_vm2, %v2253_v41  ;;  %v712_v44 = vpop.permute.xlu1 %711 }
 0x2d0   : > { %1717 = vmatpush3.xpose.msk.msra.mxu0 %vm546_vm2, %v712_v44  ;;  %1713 = vmatprep.mubr.msk.f32.mxu1 %vm2034_vm1, %v2035_v18  ;;  %v1225_v44 = vld [vmem:[%s2475_s4 + $0x8] sm:$0xff] }
 0x2d1   : > { %1726 = vmatprep.subr.mxu0 %v2035_v18 }
 0x2d3   : > { %1719 = vmatmul.mubr.msk.f32.vlgmr.msra.gmra.mrb[0].mxu0 %vm546_vm2, %v710_v45  ;;  %v878_v46 = vpop.permute.xlu1 %877  ;;  %v1810_v45 = vpack.c.bf16 %v1225_v44, %v1224_v43  ;;  %v1431_v44 = vld [vmem:[%s2479_s8 + $0x30] sm:$0xff] }
 0x2d4   : > { %1727 = vmatpush3.xpose.msk.msra.mxu0 %vm546_vm2, %v878_v46  ;;  %1728 = vmatprep.mubr.msk.f32.mxu0 %vm2034_vm1, %v2035_v18 }
 0x2d5   : > { %1736 = vmatprep.subr.mxu0 %v2035_v18 }
 0x2d7   : > { %v876_v47 = vpop.permute.xlu1 %875 }
 0x2d8   : > { %1729 = vmatmul.mubr.msk.f32.vlgmr.msra.gmra.mrb[2].mxu0 %vm546_vm2, %v876_v47 }
 0x2d9   : > { %1738 = vmatprep.mubr.msk.f32.mxu0 %vm2034_vm1, %v2035_v18 }
 0x2db   : > { %v1044_v48 = vpop.permute.xlu1 %1043 }
 0x2dc   : > { %1737 = vmatpush3.xpose.msk.msra.mxu0 %vm546_vm2, %v1044_v48  ;;  %v1226_v48 = vld [vmem:[%s2475_s4 + $0x10] sm:$0xff] }
 0x2dd   : > { %1821 = vmatprep.subr.bf16.mxu0 %v2033_v15 }
 0x2df   : > { %v1042_v49 = vpop.permute.xlu1 %1041 }
 0x2e0   : > { %1739 = vmatmul.mubr.msk.f32.vlgmr.msra.gmra.mrb[4].mxu0 %vm546_vm2, %v1042_v49  ;;  %v1227_v49 = vld [vmem:[%s2475_s4 + $0x18] sm:$0xff] }
 0x2e1   : > { %1800 = vmatprep.mubr.msk.f32.mxu0 %vm2034_vm1, %v2035_v18 }
 0x3a2   : > { %v617_v50 = vpop.f32.mrb[2].mxu1 }
 0x3a3   : > { %v621_v51 = vmul.f32 0.35355338, %v617_v50  ;;  %v1710_v52 = vpop.f32.mrb[3].mxu1  ;;  %v1813_v50 = vpack.c.bf16 %v1227_v49, %v1226_v48  ;;  %v1435_v48 = vld [vmem:[%s2479_s8 + $0x50] sm:$0xff]  ;;  %v1436_v49 = vld [vmem:[%s2479_s8 + $0x58] sm:$0xff] }
 0x3a5   : > { %v622_v53 = vsel %vm546_vm2, %v621_v51, -inf }
 0x3a6   : > { %v783_v54 = vpop.f32.mrb[0].mxu0  ;;  %623 = vmax.xlane.f32.xlu1 %v622_v53 }
 0x3a7   : > { %v787_v55 = vmul.f32 0.35355338, %v783_v54  ;;  %v1720_v56 = vpop.f32.mrb[1].mxu0 }
 0x3a9   : > { %v788_v57 = vsel %vm546_vm2, %v787_v55, -inf }
 0x3aa   : > { %789 = vmax.xlane.f32.xlu0 %v788_v57 }
 0x3ab   : > { %v949_v58 = vpop.f32.mrb[2].mxu0 }
 0x3ac   : > { %v953_v59 = vmul.f32 0.35355338, %v949_v58  ;;  %v1730_v60 = vpop.f32.mrb[3].mxu0 }
 0x3ae   : > { %v954_v61 = vsel %vm546_vm2, %v953_v59, -inf }
 0x3af   : > { %955 = vmax.xlane.f32.xlu1 %v954_v61 }
 0x3b3   : > { %v1115_v62 = vpop.f32.mrb[4].mxu0 }
 0x3b4   : > { %v1119_v63 = vmul.f32 0.35355338, %v1115_v62  ;;  %v1740_v0 = vpop.f32.mrb[5].mxu0 }
 0x3b5   : > { %v1639_v0 = vld [vmem:[%s2476_s5] ss:$0 sm:$0xff] }
 0x3b6   : > { %v1120_v1 = vsel %vm546_vm2, %v1119_v63, -inf }
 0x3b7   : > { %1121 = vmax.xlane.f32.xlu0 %v1120_v1 }
 0x3c0   : > { %633 = vrot.lane.b32.xlu1 %v2253_v41, %s2043_s29  ;;  %s1644_s29 = sshll.u32 %s2127_s17, 7 }
 0x433   : > { %v624_v2 = vpop.xlane.xlu1 %623 }
 0x434   : > { %v625_v3 = vsub.f32 %v621_v51, %v624_v2 }
 0x436   : > { %v626_v4 = vmul.f32 1.442695, %v625_v3 }
 0x437   : > { %v790_v6 = vpop.xlane.xlu0 %789 }
 0x438   : > { %1916 = vpow2.f32 %v626_v4  ;;  %v791_v7 = vsub.f32 %v787_v55, %v790_v6 }
 0x43a   : > { %v792_v8 = vmul.f32 1.442695, %v791_v7 }
 0x43c   : > { %1918 = vpow2.f32 %v792_v8  ;;  %v956_v9 = vpop.xlane.xlu1 %955 }
 0x43d   : > { %v957_v10 = vsub.f32 %v953_v59, %v956_v9 }
 0x43f   : > { %v958_v11 = vmul.f32 1.442695, %v957_v10  ;;  %v1336_v10 = vld [vmem:[%s2477_s6] sm:$0xff] }
 0x440   : > { %v634_v12 = vpop.permute.xlu1 %633 }
 0x441   : > { %1920 = vpow2.f32 %v958_v11  ;;  %1712 = vmatpush3.msra.mxu1 %v634_v12  ;;  %v1338_v12 = vld [vmem:[%s2477_s6 + $0x10] sm:$0xff] }
 0x442   : > { %v1917_v13 = vpop.eup %1916  ;;  %1721 = vmatprep.subr.mxu1 %v2035_v18 }
 0x443   : > { %v628_v14 = vsel %vm546_vm2, %v1917_v13, 0.0 }
 0x444   : > { %v1122_v16 = vpop.xlane.xlu0 %1121  ;;  %629 = vadd.xlane.f32.xlu1 %v628_v14 }
 0x445   : > { %v1123_v17 = vsub.f32 %v1119_v63, %v1122_v16  ;;  %v1425_v16 = vld [vmem:[%s2479_s8] sm:$0xff] }
 0x446   : > { %v1919_v19 = vpop.eup %1918 }
 0x447   : > { %v1124_v20 = vmul.f32 1.442695, %v1123_v17  ;;  %v794_v21 = vsel %vm546_vm2, %v1919_v19, 0.0  ;;  %v1426_v17 = vld [vmem:[%s2479_s8 + $0x8] sm:$0xff] }
 0x448   : > { %795 = vadd.xlane.f32.xlu0 %v794_v21  ;;  %v1428_v21 = vld [vmem:[%s2479_s8 + $0x18] sm:$0xff] }
 0x449   : > { %1922 = vpow2.f32 %v1124_v20  ;;  %v1822_v20 = vpack.c.bf16 %v1426_v17, %v1425_v16 }
 0x44b   : > { %v1921_v22 = vpop.eup %1920  ;;  %1823 = vmatpush3.bf16.msra.mxu0 %v1822_v20 }
 0x44c   : > { %v960_v23 = vsel %vm546_vm2, %v1921_v22, 0.0  ;;  %1824 = vmatprep.subr.bf16.mxu0 %v2033_v15 }
 0x44d   : > { %961 = vadd.xlane.f32.xlu1 %v960_v23  ;;  %v1429_v23 = vld [vmem:[%s2479_s8 + $0x20] sm:$0xff] }
 0x453   : > { %v1923_v25 = vpop.eup %1922 }
 0x454   : > { %v1126_v27 = vsel %vm546_vm2, %v1923_v25, 0.0 }
 0x455   : > { %1127 = vadd.xlane.f32.xlu0 %v1126_v27 }
 0x45e   : > { %965 = vrot.lane.b32.xlu1 %v2253_v41, %s2044_s28  ;;  %s420_s28 = scalar_lea.vmem [#allocation6], %s1619_s18  ;;  %s1968_s18 = sshll.u32 %s2050_s12, 4  ;;  %s1969_s18 = int_to_ptr.vmem [resolvable:$false] %s1968_s18 }
 0x45f   : > { %s1970_s20 = scalar_lea.vmem %s1969_s18, 256 }
 0x462   : > { %1131 = vrot.lane.b32.xlu1 %v2253_v41, %s2045_s27  ;;  %s2047_s27 = smov 8  }
 0x46b   : > { %799 = vrot.lane.b32.xlu0 %v2253_v41, %s2046_s26  ;;  %s2048_s26 = smov 16  }
 0x4d1   : > { %v630_v28 = vpop.xlane.xlu1 %629 }
 0x4d2   : > { %1924 = vrcp.f32 %v630_v28 }
 0x4d5   : > { %v796_v29 = vpop.xlane.xlu0 %795 }
 0x4d6   : > { %1926 = vrcp.f32 %v796_v29 }
 0x4da   : > { %v962_v30 = vpop.xlane.xlu1 %961 }
 0x4db   : > { %1928 = vrcp.f32 %v962_v30 }
 0x4dc   : > { %v1925_v31 = vpop.eup %1924 }
 0x4dd   : > { %v632_v32 = vmul.f32 %v1925_v31, %v1917_v13  ;;  %v1339_v13 = vld [vmem:[%s2477_s6 + $0x18] sm:$0xff]  ;;  %v1325_v31 = vsub.s32 2, %v2237_v24 }
 0x4de   : > { %v966_v36 = vpop.permute.xlu1 %965  ;;  %v1819_v14 = vpack.c.bf16 %v1339_v13, %v1338_v12 }
 0x4df   : > { %1714 = vmatmul.mubr.msk.f32.vlgmr.msra.gmra.mrb[4].mxu1 %vm546_vm2, %v632_v32  ;;  %v1330_v32 = vsub.s32 3, %v2237_v24  ;;  %v1432_v24 = vld [vmem:[%s2479_s8 + $0x38] sm:$0xff] }
 0x4e0   : > { %1723 = vmatprep.mubr.msk.f32.mxu1 %vm2034_vm1, %v2035_v18  ;;  %v1927_v34 = vpop.eup %1926 }
 0x4e1   : > { %v798_v35 = vmul.f32 %v1927_v34, %v1919_v19  ;;  %v1427_v19 = vld [vmem:[%s2479_s8 + $0x10] sm:$0xff] }
 0x4e2   : > { %v1128_v33 = vpop.xlane.xlu0 %1127  ;;  %v1132_v40 = vpop.permute.xlu1 %1131 }
 0x4e3   : > { %1930 = vrcp.f32 %v1128_v33  ;;  %v1326_v33 = vrot.slane %v2240_v26, %v1325_v31 }
 0x4e5   : > { %v1929_v38 = vpop.eup %1928 }
 0x4e6   : > { %v800_v37 = vpop.permute.xlu0 %799  ;;  %v964_v39 = vmul.f32 %v1929_v38, %v1921_v22  ;;  %v1825_v22 = vpack.c.bf16 %v1428_v21, %v1427_v19 }
 0x4e7   : > { %1722 = vmatpush3.msra.mxu1 %v800_v37 }
 0x4e8   : > { %1724 = vmatmul.mubr.msk.f32.vlgmr.msra.gmra.mrb[6].mxu1 %vm546_vm2, %v798_v35  ;;  %1731 = vmatprep.subr.mxu1 %v2035_v18  ;;  %v1622_v35 = vld [vmem:[%s2204_s30 + $0x18] sm:$0xff] }
 0x4e9   : > { %1732 = vmatpush3.msra.mxu1 %v966_v36  ;;  %1733 = vmatprep.mubr.msk.f32.mxu1 %vm2034_vm1, %v2035_v18  ;;  %v1331_v36 = vrot.slane %v2240_v26, %v1330_v32  ;;  %v1433_v26 = vld [vmem:[%s2479_s8 + $0x40] sm:$0xff] }
 0x4ea   : > { %1741 = vmatprep.subr.mxu1 %v2035_v18  ;;  %1826 = vmatpush3.bf16.msra.mxu0 %v1825_v22 }
 0x4eb   : > { %1827 = vmatprep.subr.bf16.mxu0 %v2033_v15 }
 0x4ec   : > { %1734 = vmatmul.mubr.msk.f32.vlgmr.msra.gmra.mrb[8].mxu1 %vm546_vm2, %v964_v39  ;;  %v1333_v39 = vadd.f32 1.0, %v1622_v35 }
 0x4ed   : > { %v1931_v41 = vpop.eup %1930  ;;  %1742 = vmatpush3.msra.mxu1 %v1132_v40  ;;  %1743 = vmatprep.mubr.msk.f32.mxu1 %vm2034_vm1, %v2035_v18 }
 0x4ee   : > { %v1130_v42 = vmul.f32 %v1931_v41, %v1923_v25  ;;  %1809 = vmatprep.subr.bf16.mxu1 %v2033_v15  ;;  %v1430_v25 = vld [vmem:[%s2479_s8 + $0x28] sm:$0xff] }
 0x4ef   : > { %v1828_v27 = vpack.c.bf16 %v1430_v25, %v1429_v23  ;;  %v1623_v41 = vld [vmem:[%s2204_s30 + $0x20] sm:$0xff] }
 0x4f0   : > { %1744 = vmatmul.mubr.msk.f32.vlgmr.msra.gmra.mrb[10].mxu1 %vm546_vm2, %v1130_v42 }
 0x4f1   : > { %1754 = vmatprep.mubr.msk.f32.mxu1 %vm2034_vm1, %v2035_v18  ;;  %1811 = vmatpush3.bf16.msra.mxu1 %v1810_v45  ;;  %v1831_v45 = vpack.c.bf16 %v1432_v24, %v1431_v44 }
 0x4f2   : > { %1812 = vmatprep.subr.bf16.mxu1 %v2033_v15  ;;  %1829 = vmatpush3.bf16.msra.mxu0 %v1828_v27 }
 0x4f3   : > { %1830 = vmatprep.subr.bf16.mxu0 %v2033_v15 }
 0x4f5   : > { %1814 = vmatpush3.bf16.msra.mxu1 %v1813_v50  ;;  %v1837_v50 = vpack.c.bf16 %v1436_v49, %v1435_v48 }
 0x4f6   : > { %1815 = vmatprep.subr.bf16.mxu1 %v2033_v15  ;;  %1832 = vmatpush3.bf16.msra.mxu0 %v1831_v45 }
 0x4f7   : > { %1833 = vmatprep.subr.bf16.mxu0 %v2033_v15 }
 0x5b2   : > { %v705_v46 = vpop.f32.mrb[4].mxu1 }
 0x5b3   : > { %v1715_v47 = vpop.f32.mrb[5].mxu1 }
 0x5bb   : > { %v871_v51 = vpop.f32.mrb[6].mxu1 }
 0x5bc   : > { %1208 = vrot.lane.b32.xlu0 %v871_v51, %s2047_s27  ;;  %v1725_v52 = vpop.f32.mrb[7].mxu1  ;;  %v1437_v51 = vld [vmem:[%s2479_s8 + $0x60] sm:$0xff]  ;;  %s1535_s27 = sshll.u32 %s420_s28, 4  ;;  %s2428_s27 = int_to_ptr.vmem [resolvable:$true] %s1535_s27 }
 0x5bd   : > { %v1438_v52 = vld [vmem:[%s2479_s8 + $0x68] sm:$0xff]  ;;  %s1964_s17 = scalar_lea.vmem %s2428_s27, 128  ;;  %p1971_p4 = scmp.lt.s32.totalorder %s2428_s27, %s1969_s18 }
 0x5be   : > { %p1965_p11 = scmp.ne.s32.totalorder %s2428_s27, %s1964_s17  ;;  %p1972_p7 = scmp.lt.s32.totalorder %s1970_s20, %s1964_s17 }
 0x5bf   : > { %v1037_v53 = vpop.f32.mrb[8].mxu1 }
 0x5c0   : > { %1212 = vrot.lane.b32.xlu1 %v1037_v53, %s2048_s26  ;;  %v1735_v54 = vpop.f32.mrb[9].mxu1  ;;  %v1840_v53 = vpack.c.bf16 %v1438_v52, %v1437_v51  ;;  %p1966_p0 = pnand %p1965_p11, %p2495_p12  ;;  %p1973_p8 = por %p1972_p7, %p1971_p4 }
 0x5c1   : > { %v1439_v54 = vld [vmem:[%s2479_s8 + $0x70] sm:$0xff] }
 0x5c2   : > { %p1967_p2 = pneg %p1966_p0 }
 0x5c3   : > { %v1203_v55 = vpop.f32.mrb[10].mxu1 }
 0x5c4   : > { %1216 = vrot.lane.b32.xlu0 %v1203_v55, %s2049_s11  ;;  %v1745_v56 = vpop.f32.mrb[11].mxu1  ;;  %v1440_v55 = vld [vmem:[%s2479_s8 + $0x78] sm:$0xff]  ;;  %s2426_s11 = scalar_lea.hbm %s2481_s10, %s1644_s29  ;;  %p1974_p9 = pnand %p1973_p8, %p1967_p2 }
 0x5c5   : > { %v1843_v56 = vpack.c.bf16 %v1440_v55, %v1439_v54 }
 0x62e   : > { %v1209_v57 = vpop.permute.xlu0 %1208 }
 0x62f   : > { %v1219_v59 = vsel %vm546_vm2, %v705_v46, %v1209_v57  ;;  %v1434_v46 = vld [vmem:[%s2479_s8 + $0x48] sm:$0xff]  ;;  %v1640_v57 = vld [vmem:[%s2478_s7] ss:$0 sm:$0xff] }
 0x630   : > { %v1834_v47 = vpack.c.bf16 %v1434_v46, %v1433_v26 }
 0x632   : > { %v1213_v58 = vpop.permute.xlu1 %1212  ;;  %1835 = vmatpush3.bf16.msra.mxu0 %v1834_v47 }
 0x633   : > { %v1221_v60 = vsel %vm1220_vm3, %v1219_v59, %v1213_v58  ;;  %1836 = vmatprep.subr.bf16.mxu0 %v2033_v15 }
 0x636   : > { %v1217_v61 = vpop.permute.xlu0 %1216  ;;  %1838 = vmatpush3.bf16.msra.mxu0 %v1837_v50 }
 0x637   : > { %v1223_v62 = vsel %vm1222_vm4, %v1221_v60, %v1217_v61  ;;  %1839 = vmatprep.subr.bf16.mxu0 %v2033_v15 }
 0x638   : > { %1755 = vmatmul.mubr.msk.f32.vlgmr.msra.gmra.mrb[12].mxu1 %vm431_vm0, %v1223_v62 }
 0x639   : > { %1765 = vmatprep.mubr.msk.f32.mxu1 %vm2034_vm1, %v2035_v18 }
 0x63a   : > { %1841 = vmatpush3.bf16.msra.mxu0 %v1840_v53 }
 0x63b   : > { %1842 = vmatprep.subr.bf16.mxu0 %v2033_v15 }
 0x63e   : > { %1844 = vmatpush3.bf16.msra.mxu0 %v1843_v56 }
 0x70b   : > { %v1297_v63 = vpop.f32.mrb[12].mxu1 }
 0x70c   : > { %v1301_v1 = vadd.f32 %v1297_v63, %v2211_v5  ;;  %v1756_v2 = vpop.f32.mrb[13].mxu1  ;;  %v1337_v5 = vld [vmem:[%s2477_s6 + $0x8] sm:$0xff] }
 0x70d   : > { %v1816_v11 = vpack.c.bf16 %v1337_v5, %v1336_v10  ;;  %v1642_v2 = vld [vmem:[%s2480_s9] ss:$0 sm:$0xff] }
 0x70e   : > { %v2333_v3 = vadd.f32 %v1639_v0, %v1301_v1 }
 0x70f   : > { %1817 = vmatpush3.bf16.msra.mxu1 %v1816_v11 }
 0x710   : > { %v1310_v4 = vsel %vm431_vm0, %v2333_v3, 0.0  ;;  %1818 = vmatprep.subr.bf16.mxu1 %v2033_v15 }
 0x711   : > { %1311 = vadd.xlane.f32.xlu1 %v1310_v4 }
 0x713   : > { %1820 = vmatpush3.bf16.msra.mxu1 %v1819_v14 }
 0x79e   : > { %v1312_v6 = vpop.xlane.xlu1 %1311 }
 0x79f   : > { %v1313_v7 = vmul.f32 0.03125, %v1312_v6 }
 0x7a1   : > { %v1314_v8 = vsub.f32 %v2333_v3, %v1313_v7 }
 0x7a3   : > { %v1315_v9 = vmul.f32 %v1314_v8, %v1314_v8 }
 0x7a5   : > { %v1316_v18 = vsel %vm431_vm0, %v1315_v9, 0.0 }
 0x7a6   : > { %1317 = vadd.xlane.f32.xlu0 %v1316_v18 }
 0x833   : > { %v1318_v28 = vpop.xlane.xlu0 %1317 }
 0x834   : > { %v1319_v29 = vmul.f32 0.03125, %v1318_v28 }
 0x836   : > { %v1320_v30 = vadd.f32 1e-05, %v1319_v29 }
 0x838   : > { %1932 = vrsqrt.f32 %v1320_v30 }
 0x842   : > { %v1933_v34 = vpop.eup %1932 }
 0x843   : > { %v1322_v37 = vmul.f32 %v1933_v34, %v1314_v8 }
 0x845   : > { %v1327_v38 = vmul.f32 %v1326_v33, %v1322_v37 }
 0x847   : > { %v1332_v40 = vadd.f32 %v1331_v36, %v1327_v38 }
 0x849   : > { %v1334_v42 = vmul.f32 %v1333_v39, %v1332_v40 }
 0x84b   : > { %v1335_v43 = vadd.f32 %v1623_v41, %v1334_v42 }
 0x84d   : > { %1766 = vmatmul.mubr.msk.f32.vlgmr.msra.gmra.mrb[14].mxu1 %vm431_vm0, %v1335_v43 }
 0x920   : > { %v1416_v58 = vpop.f32.mrb[14].mxu1 }
 0x921   : > { %v1417_v59 = vadd.f32 %v1640_v57, %v1416_v58  ;;  %v1767_v60 = vpop.f32.mrb[15].mxu1 }
 0x923   : > { %v1421_v15 = vmul.f32 0.70710677, %v1417_v59  ;;  %v1420_v62 = vmul.f32 0.5, %v1417_v59 }
 0x925   : > { %1934 = verf.f32 %v1421_v15 }
 0x92f   : > { %v1935_v61 = vpop.eup %1934 }
 0x930   : > { %v1423_v63 = vadd.f32 1.0, %v1935_v61 }
 0x932   : > { %v1424_v0 = vmul.f32 %v1423_v63, %v1420_v62 }
 0x934   : > { %1801 = vmatmul.mubr.f32.vlgmr.msra.gmra.mrb[6].mxu0 %v1424_v0 }
 0xa07   : > { %v1507_v1 = vpop.f32.mrb[6].mxu0 }
 0xa08   : > { %v1511_v4 = vadd.f32 %v1507_v1, %v2333_v3  ;;  %v1802_v6 = vpop.f32.mrb[7].mxu0 }
 0xa0a   : > { %v1519_v7 = vadd.f32 %v1642_v2, %v1511_v4 }
 0xa0c   : > { %1520 = vst.msk [vmem:[%s420_s28] sm:$0xff] %vm431_vm0, %v1519_v7 }
 0xa0d   : > { %1977 = shalt.err (!%p1974_p9)
}
 0xa0e   : > { %s1978_s23 = scalar_lea.hbm %s2426_s11, 128  ;;  %s1982_s28 = scalar_lea.hbm %s2481_s10, 256 }
 0xa0f   : > { %p1979_p13 = scmp.ne.s32.totalorder %s2426_s11, %s1978_s23  ;;  %p1983_p6 = scmp.lt.u32.totalorder %s2426_s11, %s2481_s10 }
 0xa10   : > { %p1984_p10 = scmp.lt.u32.totalorder %s1982_s28, %s1978_s23  ;;  %p1986_p0 = scmp.lt.u32.totalorder %s1978_s23, %s2426_s11 }
 0xa11   : > { %p1980_p3 = pnand %p1979_p13, %p2495_p12 }
 0xa12   : > { %p1985_p11 = por %p1984_p10, %p1983_p6 }
 0xa13   : > { %p1981_p5 = pneg %p1980_p3 }
 0xa14   : > { %p1987_p2 = por %p1986_p0, %p1985_p11 }
 0xa16   : > { %p1988_p4 = pnand %p1987_p2, %p1981_p5 }
 0xa18   : > { %1991 = shalt.err (!%p1988_p4)
}
 0xa19   : > { %1851 = dma.vmem_to_hbm [thread:$0]  (%p2495_p12), %s2428_s27, 128, %s2426_s11, %s1522_s22  }
 0xa1a PF: > { %s1547_s17 = sand.u32 1, %s2018_s13   ;;  %p2496_p7 = scmp.ne.s32.totalorder %s2488_s25, 0 }
 0xa1b   : > { %s1548_s12 = scalar_lea.sflag [#allocation5], %s1547_s17 }
 0xa1c   : > { %p1858_p8 = pnand %p1615_p1, %p2496_p7 }
 0xa1e   : > { %2013 = dma.done.wait (!%p1858_p8), %s1548_s12, 128  }
 0xa1f   : > { %2015 = vsyncadd (!%p1858_p8), %s1548_s12, 4294967168  ;;  %s2497_s18 = sld [smem:[#allocation9_spill]]  ;;  %p21_p9 = scmp.ge.s32.totalorder %s2131_s19, 4  }
 0xa20   : > { %s2498_s13 = smov %s2022_s14  ;;  %s2499_s14 = smov %s2026_s15 }
 0xa21   : > { %s2501_s16 = smov %s2131_s19  ;;  %23 = sbr.rel (!%p21_p9) target bundleno = 4 (0x4), region = 147 }
 0xa25   : > { %s2500_s15 = smov %s2497_s18 }
 0xa28   :  { %1553 = vsyncpa [#allocation4], 1 }
 0xa29   :  { %1555 = vsyncpa [#allocation4 + $0x1], 1 }
 0xa2a   :  { %1556 = vsyncpa [#allocation5], 1 }
 0xa2b   :  { %1558 = vsyncpa [#allocation5 + $0x1], 1 }

</bundles_post_ra>
